<compile_context>
chip_gen: v6e
topology: v6e:2x2x1
jax: 0.10.0
libtpu: 0.0.40
codegen_flags: <defaults>
</compile_context>

<pallas_src>
import functools

import jax
import jax.numpy as jnp
from jax.experimental import pallas as pl
from jax.experimental.pallas import tpu as pltpu

EPS = 1e-5


def _vmem_capacity_bytes():
    try:
        return int(pltpu.get_tpu_info().vmem_capacity_bytes)
    except Exception:
        return 64 * 1024 * 1024   # conservative (v7x per-TensorCore VMEM)


def _pick_tn(n, cap):
    """Largest divisor of n <= cap, mildly preferring an even number of grid steps
    (v7x megacore shards the 'parallel' batch axis across two TensorCores)."""
    cap = max(1, min(n, cap))
    divs = [d for d in range(cap, 0, -1) if n % d == 0]
    for d in divs:
        if (n // d) % 2 == 0:
            return d
    return divs[0]


def _shift_along_l(x, direction):
    """Shift along the last (lane) axis with zero fill.

    direction=+1: out[..., l] = x[..., l-1]  (zero at l == 0)    -> conv tap k=0
    direction=-1: out[..., l] = x[..., l+1]  (zero at l == L-1)  -> conv tap k=2
    Uses the XLU lane rotate (pltpu.roll) + an iota mask: no VMEM concat temporaries.
    """
    L = x.shape[-1]
    axis = x.ndim - 1
    shift = 1 if direction > 0 else (L - 1)
    rolled = pltpu.roll(x, shift, axis=axis)
    lidx = jax.lax.broadcasted_iota(jnp.int32, x.shape, axis)
    mask = (lidx >= 1) if direction > 0 else (lidx < L - 1)
    return jnp.where(mask, rolled, jnp.zeros_like(rolled))


def _conv3_one_sample(wk0, wk1, wk2, xc, xm, xp):
    """k=3 conv for one sample: (Cout, L) = sum_k w_k @ x_shift_k, f32 accumulate."""
    acc = jnp.dot(wk1, xc, preferred_element_type=jnp.float32)
    acc = acc + jnp.dot(wk0, xm, preferred_element_type=jnp.float32)
    acc = acc + jnp.dot(wk2, xp, preferred_element_type=jnp.float32)
    return acc


def _conv1_stats_kernel(x_ref, w_ref, y_ref, s_ref, ss_ref, *, compute_dtype):
    """y1 = conv1(x); emit per-tile (sum, sum-of-squares) BN1 partials from f32 acc."""
    TN, C, L = x_ref.shape
    xb = x_ref[...].astype(compute_dtype)          # cast BEFORE building tap shifts
    xm = _shift_along_l(xb, +1)                    # x[:, :, l-1]
    xp = _shift_along_l(xb, -1)                    # x[:, :, l+1]
    wk0, wk1, wk2 = w_ref[0], w_ref[1], w_ref[2]   # (Cout, Cin) each
    s = jnp.zeros((C, 1), jnp.float32)
    ss = jnp.zeros((C, 1), jnp.float32)
    for n in range(TN):                            # TN is a small compile-time constant
        acc = _conv3_one_sample(wk0, wk1, wk2, xb[n], xm[n], xp[n])   # (Cout, L) f32
        y_ref[n] = acc.astype(y_ref.dtype)
        s = s + jnp.sum(acc, axis=1, keepdims=True)
        ss = ss + jnp.sum(acc * acc, axis=1, keepdims=True)
    s_ref[0] = s
    ss_ref[0] = ss


def _bn_relu_conv2_stats_kernel(y1_ref, w_ref, sc_ref, bi_ref, y2_ref, s_ref, ss_ref,
                                *, compute_dtype):
    """h = relu(y1*scale1 + bias1) in f32; y2 = conv2(h); emit BN2 partials."""
    TN, C, L = y1_ref.shape
    sc = sc_ref[...]                               # (C, 1) f32
    bi = bi_ref[...]                               # (C, 1) f32
    h = jnp.maximum(y1_ref[...].astype(jnp.float32) * sc + bi, 0.0)   # (TN, C, L) f32
    hb = h.astype(compute_dtype)
    hm = _shift_along_l(hb, +1)
    hp = _shift_along_l(hb, -1)
    wk0, wk1, wk2 = w_ref[0], w_ref[1], w_ref[2]
    s = jnp.zeros((C, 1), jnp.float32)
    ss = jnp.zeros((C, 1), jnp.float32)
    for n in range(TN):
        acc = _conv3_one_sample(wk0, wk1, wk2, hb[n], hm[n], hp[n])   # (Cout, L) f32
        y2_ref[n] = acc.astype(y2_ref.dtype)
        s = s + jnp.sum(acc, axis=1, keepdims=True)
        ss = ss + jnp.sum(acc * acc, axis=1, keepdims=True)
    s_ref[0] = s
    ss_ref[0] = ss


def _bn_residual_relu_kernel(y2_ref, x_ref, sc_ref, bi_ref, out_ref):
    """out = relu(y2*scale2 + bias2 + x), all elementwise math in f32."""
    sc = sc_ref[...]
    bi = bi_ref[...]
    out_ref[...] = jnp.maximum(
        y2_ref[...].astype(jnp.float32) * sc + bi + x_ref[...], 0.0
    ).astype(out_ref.dtype)


def _fold_bn(s_parts, ss_parts, gamma_c1, beta_c1, count):
    """Finalize per-channel batch stats and fold gamma*rsqrt into one scale & bias."""
    s = jnp.sum(s_parts, axis=0)                        # (C, 1)
    ss = jnp.sum(ss_parts, axis=0)                      # (C, 1)
    mean = s / count
    var = jnp.maximum(ss / count - mean * mean, 0.0)    # biased variance, clamped
    scale = gamma_c1 * jax.lax.rsqrt(var + EPS)
    bias = beta_c1 - mean * scale
    return scale, bias


def basic_block(x_ncl, w1, w2, g1, b1, g2, b2, *, compute_dtype=jnp.bfloat16):
    """x_ncl: (N, C, L) (PyTorch Conv1d layout). Returns (N, C, L) float32.

    w1/w2: (3, Cin, Cout) with w[k, ci, co] == torch_weight[co, ci, k].
    g*/b*: per-channel BatchNorm affine params (any shape with C elements).
    """
    N, C, L = x_ncl.shape
    assert w1.shape == (3, C, C) and w2.shape == (3, C, C), (
        "stride=1 / downsample=None path requires inplanes == planes")

    x = x_ncl.astype(jnp.float32)
    # Per-tap transposed weights (3, Cout, Cin), already in matmul-operand dtype.
    w1t = jnp.transpose(w1, (0, 2, 1)).astype(compute_dtype)
    w2t = jnp.transpose(w2, (0, 2, 1)).astype(compute_dtype)
    g1c = jnp.reshape(jnp.asarray(g1, jnp.float32), (C, 1))
    b1c = jnp.reshape(jnp.asarray(b1, jnp.float32), (C, 1))
    g2c = jnp.reshape(jnp.asarray(g2, jnp.float32), (C, 1))
    b2c = jnp.reshape(jnp.asarray(b2, jnp.float32), (C, 1))

    inter_dtype = (jnp.bfloat16
                   if jnp.dtype(compute_dtype) == jnp.dtype(jnp.bfloat16)
                   else jnp.float32)

    # --- generation-aware tile sizing ----------------------------------------
    vmem_cap = _vmem_capacity_bytes()                 # 64 MiB v7x, 128 MiB v5e/v6e
    vmem_limit = max(32 * 2**20, min((vmem_cap * 3) // 4, 112 * 2**20))
    weight_bytes = 3 * C * C * jnp.dtype(compute_dtype).itemsize
    # Per-step working set ~ double-buffered f32 in + bf16 out + tap-shift / BN
    # temporaries, roughly 10-12x the f32 tile: stay conservative.
    tile_cap_bytes = max(1, (vmem_limit - 4 * weight_bytes) // 12)
    sample_bytes = C * L * 4
    tn_cap = min(8, max(1, tile_cap_bytes // max(1, sample_bytes)))  # static-unroll cap
    TN = _pick_tn(N, tn_cap)
    NT = N // TN

    cparams = pltpu.CompilerParams(
        dimension_semantics=("parallel",),
        vmem_limit_bytes=int(vmem_limit),
    )

    tile_spec = pl.BlockSpec((TN, C, L), lambda i: (i, 0, 0))
    w_spec = pl.BlockSpec((3, C, C), lambda i: (0, 0, 0))
    vec_spec = pl.BlockSpec((C, 1), lambda i: (0, 0))
    stat_spec = pl.BlockSpec((1, C, 1), lambda i: (i, 0, 0))

    count = float(N * L)

    # ---- pass 1: conv1 + BN1 partial stats -----------------------------------
    y1, s1, ss1 = pl.pallas_call(
        functools.partial(_conv1_stats_kernel, compute_dtype=compute_dtype),
        out_shape=(jax.ShapeDtypeStruct((N, C, L), inter_dtype),
                   jax.ShapeDtypeStruct((NT, C, 1), jnp.float32),
                   jax.ShapeDtypeStruct((NT, C, 1), jnp.float32)),
        grid=(NT,),
        in_specs=[tile_spec, w_spec],
        out_specs=(tile_spec, stat_spec, stat_spec),
        compiler_params=cparams,
    )(x, w1t)

    scale1, bias1 = _fold_bn(s1, ss1, g1c, b1c, count)

    # ---- pass 2: BN1 + ReLU + conv2 + BN2 partial stats ----------------------
    y2, s2, ss2 = pl.pallas_call(
        functools.partial(_bn_relu_conv2_stats_kernel, compute_dtype=compute_dtype),
        out_shape=(jax.ShapeDtypeStruct((N, C, L), inter_dtype),
                   jax.ShapeDtypeStruct((NT, C, 1), jnp.float32),
                   jax.ShapeDtypeStruct((NT, C, 1), jnp.float32)),
        grid=(NT,),
        in_specs=[tile_spec, w_spec, vec_spec, vec_spec],
        out_specs=(tile_spec, stat_spec, stat_spec),
        compiler_params=cparams,
    )(y1, w2t, scale1, bias1)

    scale2, bias2 = _fold_bn(s2, ss2, g2c, b2c, count)

    # ---- pass 3: BN2 + residual add + ReLU -----------------------------------
    out = pl.pallas_call(
        _bn_residual_relu_kernel,
        out_shape=jax.ShapeDtypeStruct((N, C, L), jnp.float32),
        grid=(NT,),
        in_specs=[tile_spec, tile_spec, vec_spec, vec_spec],
        out_specs=tile_spec,
        compiler_params=cparams,
    )(y2, x, scale2, bias2)

    return out


def basic_block_reference(x_ncl, w1, w2, g1, b1, g2, b2):
    """Pure-JAX reference mirroring the PyTorch forward (training-mode BN)."""
    def conv1d(x, w_kio):                     # w_kio: (K, Cin, Cout) -> lax OIH layout
        w = jnp.transpose(w_kio, (2, 1, 0))
        return jax.lax.conv_general_dilated(
            x, w, window_strides=(1,), padding=((1, 1),),
            dimension_numbers=('NCH', 'OIH', 'NCH'))

    def bn(x, g, b):                          # x: (N, C, L)
        m = jnp.mean(x, axis=(0, 2), keepdims=True)
        v = jnp.mean((x - m) ** 2, axis=(0, 2), keepdims=True)
        return ((x - m) * jax.lax.rsqrt(v + EPS) * jnp.reshape(g, (1, -1, 1))
                + jnp.reshape(b, (1, -1, 1)))

    h = jax.nn.relu(bn(conv1d(x_ncl, w1), g1, b1))
    h = bn(conv1d(h, w2), g2, b2)
    return jax.nn.relu(h + x_ncl)


if __name__ == "__main__":
    # Small shapes consistent with the module: inplanes == planes (stride=1, no downsample)
    N, C, L = 2, 8, 16
    key = jax.random.PRNGKey(0)
    k_x, k_w1, k_w2, k_g1, k_b1, k_g2, k_b2 = jax.random.split(key, 7)

    x = jax.random.normal(k_x, (N, C, L), dtype=jnp.float32)
    # Conv weights stored as (K, Cin, Cout); w_kio[k, ci, co] == torch_weight[co, ci, k].
    w1 = jax.random.normal(k_w1, (3, C, C), dtype=jnp.float32) * 0.2
    w2 = jax.random.normal(k_w2, (3, C, C), dtype=jnp.float32) * 0.2
    g1 = 1.0 + 0.1 * jax.random.normal(k_g1, (C,), dtype=jnp.float32)
    b1 = 0.1 * jax.random.normal(k_b1, (C,), dtype=jnp.float32)
    g2 = 1.0 + 0.1 * jax.random.normal(k_g2, (C,), dtype=jnp.float32)
    b2 = 0.1 * jax.random.normal(k_b2, (C,), dtype=jnp.float32)

    ref = basic_block_reference(x, w1, w2, g1, b1, g2, b2)

    # f32 path: bit-close to the reference (validates the kernel logic tightly).
    out_f32 = jax.block_until_ready(
        basic_block(x, w1, w2, g1, b1, g2, b2, compute_dtype=jnp.float32))
    assert out_f32.shape == (N, C, L)
    assert jnp.allclose(out_f32, ref, rtol=1e-4, atol=1e-4), (
        f"f32 path max abs err {jnp.max(jnp.abs(out_f32 - ref))}")

    # Default bf16-operand / bf16-intermediate path (same kernel code, looser tolerance).
    out_bf16 = jax.block_until_ready(basic_block(x, w1, w2, g1, b1, g2, b2))
    assert out_bf16.shape == (N, C, L)
    assert bool(jnp.isfinite(out_bf16).all())
    assert jnp.allclose(out_bf16, ref, rtol=0.15, atol=0.15), (
        f"bf16 path max abs err {jnp.max(jnp.abs(out_bf16 - ref))}")

    print("KERNEL_OK")
</pallas_src>

<mosaic_0001>
module attributes {stable_mosaic.version = 11 : i64} {
  func.func @_conv1_stats_kernel(%arg0: i32, %arg1: memref<1x8x16xf32, #tpu.memory_space<vmem>>, %arg2: memref<3x8x8xf32, #tpu.memory_space<vmem>>, %arg3: memref<1x8x16xf32, #tpu.memory_space<vmem>>, %arg4: memref<1x8x1xf32, #tpu.memory_space<vmem>>, %arg5: memref<1x8x1xf32, #tpu.memory_space<vmem>>) attributes {dimension_semantics = [#tpu.dimension_semantics<parallel>], iteration_bounds = array<i64: 2>, scalar_prefetch = 0 : i64, scratch_operands = 0 : i64, tpu.core_type = #tpu.core_type<tc>, window_params = [{transform_indices = @transform_0, window_bounds = array<i64: 1, 8, 16>}, {pipeline_mode = #tpu.pipeline_mode<synchronous>, transform_indices = @transform_1, window_bounds = array<i64: 3, 8, 8>}, {transform_indices = @transform_2, window_bounds = array<i64: 1, 8, 16>}, {transform_indices = @transform_3, window_bounds = array<i64: 1, 8, 1>}, {transform_indices = @transform_4, window_bounds = array<i64: 1, 8, 1>}]} {
    %c0 = arith.constant 0 : index
    %c0_0 = arith.constant 0 : index
    %c0_1 = arith.constant 0 : index
    %0 = vector.load %arg1[%c0, %c0_0, %c0_1] : memref<1x8x16xf32, #tpu.memory_space<vmem>>, vector<1x8x16xf32>
    %c1_i32 = arith.constant 1 : i32
    %1 = tpu.dynamic_rotate %0 by %c1_i32 dim 2 : vector<1x8x16xf32>, i32 -> vector<1x8x16xf32>
    %2 = tpu.iota {dimensions = array<i32: 2>} : vector<1x8x16xi32>
    %c1_i32_2 = arith.constant 1 : i32
    %3 = vector.broadcast %c1_i32_2 : i32 to vector<1x8x16xi32>
    %4 = arith.cmpi sge, %2, %3 : vector<1x8x16xi32>
    %cst = arith.constant 0.000000e+00 : f32
    %5 = vector.broadcast %cst : f32 to vector<1x8x16xf32>
    %6 = arith.select %4, %1, %5 : vector<1x8x16xi1>, vector<1x8x16xf32>
    %c15_i32 = arith.constant 15 : i32
    %7 = tpu.dynamic_rotate %0 by %c15_i32 dim 2 : vector<1x8x16xf32>, i32 -> vector<1x8x16xf32>
    %8 = tpu.iota {dimensions = array<i32: 2>} : vector<1x8x16xi32>
    %c15_i32_3 = arith.constant 15 : i32
    %9 = vector.broadcast %c15_i32_3 : i32 to vector<1x8x16xi32>
    %10 = arith.cmpi slt, %8, %9 : vector<1x8x16xi32>
    %cst_4 = arith.constant 0.000000e+00 : f32
    %11 = vector.broadcast %cst_4 : f32 to vector<1x8x16xf32>
    %12 = arith.select %10, %7, %11 : vector<1x8x16xi1>, vector<1x8x16xf32>
    %c0_5 = arith.constant 0 : index
    %c0_6 = arith.constant 0 : index
    %c0_7 = arith.constant 0 : index
    %13 = vector.load %arg2[%c0_5, %c0_6, %c0_7] : memref<3x8x8xf32, #tpu.memory_space<vmem>>, vector<1x8x8xf32>
    %14 = vector.shape_cast %13 : vector<1x8x8xf32> to vector<8x8xf32>
    %c1 = arith.constant 1 : index
    %c0_8 = arith.constant 0 : index
    %c0_9 = arith.constant 0 : index
    %15 = vector.load %arg2[%c1, %c0_8, %c0_9] : memref<3x8x8xf32, #tpu.memory_space<vmem>>, vector<1x8x8xf32>
    %16 = vector.shape_cast %15 : vector<1x8x8xf32> to vector<8x8xf32>
    %c2 = arith.constant 2 : index
    %c0_10 = arith.constant 0 : index
    %c0_11 = arith.constant 0 : index
    %17 = vector.load %arg2[%c2, %c0_10, %c0_11] : memref<3x8x8xf32, #tpu.memory_space<vmem>>, vector<1x8x8xf32>
    %18 = vector.shape_cast %17 : vector<1x8x8xf32> to vector<8x8xf32>
    %cst_12 = arith.constant 0.000000e+00 : f32
    %19 = vector.broadcast %cst_12 : f32 to vector<8x1xf32>
    %cst_13 = arith.constant 0.000000e+00 : f32
    %20 = vector.broadcast %cst_13 : f32 to vector<8x1xf32>
    %21 = vector.shape_cast %0 : vector<1x8x16xf32> to vector<8x16xf32>
    %22 = vector.shape_cast %6 : vector<1x8x16xf32> to vector<8x16xf32>
    %23 = vector.shape_cast %12 : vector<1x8x16xf32> to vector<8x16xf32>
    %cst_14 = arith.constant dense<0.000000e+00> : vector<8x16xf32>
    %24 = tpu.matmul %16, %21, %cst_14 {dimension_numbers = #tpu.dot_dimension_numbers<[1], [0], [0], [1], [0, 0, 1, 1], [], []>} : vector<8x8xf32>, vector<8x16xf32>, vector<8x16xf32> -> vector<8x16xf32>
    %cst_15 = arith.constant dense<0.000000e+00> : vector<8x16xf32>
    %25 = tpu.matmul %14, %22, %cst_15 {dimension_numbers = #tpu.dot_dimension_numbers<[1], [0], [0], [1], [0, 0, 1, 1], [], []>} : vector<8x8xf32>, vector<8x16xf32>, vector<8x16xf32> -> vector<8x16xf32>
    %26 = arith.addf %24, %25 : vector<8x16xf32>
    %cst_16 = arith.constant dense<0.000000e+00> : vector<8x16xf32>
    %27 = tpu.matmul %18, %23, %cst_16 {dimension_numbers = #tpu.dot_dimension_numbers<[1], [0], [0], [1], [0, 0, 1, 1], [], []>} : vector<8x8xf32>, vector<8x16xf32>, vector<8x16xf32> -> vector<8x16xf32>
    %28 = arith.addf %26, %27 : vector<8x16xf32>
    %c0_17 = arith.constant 0 : index
    %c0_18 = arith.constant 0 : index
    %c0_19 = arith.constant 0 : index
    %29 = vector.load %arg3[%c0_17, %c0_18, %c0_19] : memref<1x8x16xf32, #tpu.memory_space<vmem>>, vector<1x8x16xf32>
    %30 = vector.shape_cast %29 : vector<1x8x16xf32> to vector<8x16xf32>
    %31 = vector.shape_cast %28 : vector<8x16xf32> to vector<1x8x16xf32>
    tpu.vector_store %arg3[%c0_17, %c0_18, %c0_19], %31 {strides = array<i32>} : memref<1x8x16xf32, #tpu.memory_space<vmem>>, vector<1x8x16xf32>,
    %cst_20 = arith.constant dense<0.000000e+00> : vector<8xf32>
    %32 = vector.multi_reduction <add>, %28, %cst_20 [1] : vector<8x16xf32> to vector<8xf32>
    %33 = vector.shape_cast %32 : vector<8xf32> to vector<8x1xf32>
    %34 = arith.addf %19, %33 : vector<8x1xf32>
    %35 = arith.mulf %28, %28 : vector<8x16xf32>
    %cst_21 = arith.constant dense<0.000000e+00> : vector<8xf32>
    %36 = vector.multi_reduction <add>, %35, %cst_21 [1] : vector<8x16xf32> to vector<8xf32>
    %37 = vector.shape_cast %36 : vector<8xf32> to vector<8x1xf32>
    %38 = arith.addf %20, %37 : vector<8x1xf32>
    %c0_22 = arith.constant 0 : index
    %c0_23 = arith.constant 0 : index
    %c0_24 = arith.constant 0 : index
    %39 = vector.load %arg4[%c0_22, %c0_23, %c0_24] : memref<1x8x1xf32, #tpu.memory_space<vmem>>, vector<1x8x1xf32>
    %40 = vector.shape_cast %39 : vector<1x8x1xf32> to vector<8x1xf32>
    %41 = vector.shape_cast %34 : vector<8x1xf32> to vector<1x8x1xf32>
    tpu.vector_store %arg4[%c0_22, %c0_23, %c0_24], %41 {strides = array<i32>} : memref<1x8x1xf32, #tpu.memory_space<vmem>>, vector<1x8x1xf32>,
    %c0_25 = arith.constant 0 : index
    %c0_26 = arith.constant 0 : index
    %c0_27 = arith.constant 0 : index
    %42 = vector.load %arg5[%c0_25, %c0_26, %c0_27] : memref<1x8x1xf32, #tpu.memory_space<vmem>>, vector<1x8x1xf32>
    %43 = vector.shape_cast %42 : vector<1x8x1xf32> to vector<8x1xf32>
    %44 = vector.shape_cast %38 : vector<8x1xf32> to vector<1x8x1xf32>
    tpu.vector_store %arg5[%c0_25, %c0_26, %c0_27], %44 {strides = array<i32>} : memref<1x8x1xf32, #tpu.memory_space<vmem>>, vector<1x8x1xf32>,
    return
  }
  func.func @transform_0(%arg0: i32) -> (i32, i32, i32) {
    %c0_i32 = arith.constant 0 : i32
    %c0_i32_0 = arith.constant 0 : i32
    %c0_i32_1 = arith.constant 0 : i32
    return %arg0, %c0_i32, %c0_i32_0 : i32, i32, i32
  }
  func.func @transform_1(%arg0: i32) -> (i32, i32, i32) {
    %c0_i32 = arith.constant 0 : i32
    %c0_i32_0 = arith.constant 0 : i32
    %c0_i32_1 = arith.constant 0 : i32
    %c0_i32_2 = arith.constant 0 : i32
    return %c0_i32, %c0_i32_0, %c0_i32_1 : i32, i32, i32
  }
  func.func @transform_2(%arg0: i32) -> (i32, i32, i32) {
    %c0_i32 = arith.constant 0 : i32
    %c0_i32_0 = arith.constant 0 : i32
    %c0_i32_1 = arith.constant 0 : i32
    return %arg0, %c0_i32, %c0_i32_0 : i32, i32, i32
  }
  func.func @transform_3(%arg0: i32) -> (i32, i32, i32) {
    %c0_i32 = arith.constant 0 : i32
    %c0_i32_0 = arith.constant 0 : i32
    %c0_i32_1 = arith.constant 0 : i32
    return %arg0, %c0_i32, %c0_i32_0 : i32, i32, i32
  }
  func.func @transform_4(%arg0: i32) -> (i32, i32, i32) {
    %c0_i32 = arith.constant 0 : i32
    %c0_i32_0 = arith.constant 0 : i32
    %c0_i32_1 = arith.constant 0 : i32
    return %arg0, %c0_i32, %c0_i32_0 : i32, i32, i32
  }
}

</mosaic_0001>

<bundles_post_ra>
// kernel: tpu_custom_call.1
= control target key start
LH: loop header
LB: loop body
LE: loop exit
PB: predicated region body
PF: predicated region fallthrough
CT: control target
= control target key end

     0   :  { %10 = vsyncpa [#allocation3], 0  ;;  %s1103_s0 = inlined_call_operand.hbm [shape: f32[2,8,16], index: 0, kind: input, shape index: {}]   ;;  %s1104_s1 = inlined_call_operand.hbm [shape: f32[3,8,8], index: 1, kind: input, shape index: {}]   ;;  %s1105_s2 = inlined_call_operand.hbm [shape: f32[2,8,16], index: 2, kind: output, shape index: {0}]   ;;  %s1106_s3 = inlined_call_operand.vmem [shape: f32[2,8,1], index: 3, kind: output, shape index: {1}]   ;;  %s1107_s4 = inlined_call_operand.vmem [shape: f32[2,8,1], index: 4, kind: output, shape index: {2}]  }
   0x1   :  { %12 = vsyncpa [#allocation3 + $0x1], 0 }
   0x2   :  { %13 = vsyncpa [#allocation6], 0 }
   0x3   :  { %14 = vsyncpa [#allocation4], 0 }
   0x4   :  { %16 = vsyncpa [#allocation4 + $0x1], 0  ;;  %s931_s15 = smov 0   ;;  %s933_s16 = smov 0  }
   0x5   :  { %s935_s17 = smov 0   ;;  %s937_s18 = smov 0  }
   0x6 LB: > { %s952_s19 = sadd.s32 4294967295, %s894_s18   ;;  %s666_s20 = sadd.s32 4294967294, %s894_s18   ;;  %s894_s18 = sphi %s937_s18, %s1129_s18   ;;  %s890_s17 = sphi %s935_s17, %s1128_s17   ;;  %s886_s16 = sphi %s933_s16, %s1127_s16   ;;  %s882_s15 = sphi %s931_s15, %s1126_s15  }
   0x7   : > { %p42_p0 = scmp.ne.s32.totalorder %s886_s16, %s882_s15  ;;  %p1108_p1 = scmp.eq.s32.totalorder %s952_s19, 0 }
   0x8   : > { %p93_p3 = scmp.eq.s32.totalorder %s666_s20, 1  ;;  %p667_p5 = scmp.ge.s32.totalorder %s894_s18, 1 }
   0x9   : > { %p961_p4 = por %p1108_p1, %p42_p0  ;;  %p152_p7 = scmp.lt.s32.totalorder %s894_s18, 3 }
   0xa   : > { %p966_p6 = por %p93_p3, %p42_p0  ;;  %s896_s24 = smov [#allocation5]  }
   0xb   : > { %s1112_s21 = scalar_select %p961_p4, 1, 0 }
   0xc   : > { %s1113_s22 = scalar_select %p966_p6, 1, 0 }
   0xd   : > { %p971_p8 = pnand %p667_p5, %p152_p7  ;;  %s164_s25 = sshll.u32 %s896_s24, 4  ;;  %s165_s25 = int_to_ptr.vmem [resolvable:$true] %s164_s25 }
   0xe   : > { %s985_s27 = sadd.s32 1, %s894_s18   ;;  %s29_s28 = sadd.s32 1, %s890_s17 }
   0xf   : > { %s1114_s23 = scalar_select %p971_p8, 1, 0 }
  0x10   : > { %p716_p9 = pneg %p971_p8  ;;  %s26_s29 = ssub.s32 %s894_s18, %s985_s27 }
  0x11   : > { %s783_s30 = scalar_lea.vmem %s165_s25, 384  ;;  %p791_p5 = scmp.lt.s32.totalorder %s165_s25, %s165_s25 }
  0x12   : > { %p980_p11 = pnand %p716_p9, %p1108_p1  ;;  %p784_p13 = scmp.ne.s32.totalorder %s165_s25, %s783_s30 }
  0x13   : > { %p792_p7 = scmp.lt.s32.totalorder %s783_s30, %s783_s30 }
  0x14   : > { %p774_p12 = pneg %p980_p11 }
  0x15   : > { %p793_p10 = por %p792_p7, %p791_p5 }
  0x16   : > { %p786_p0 = pnand %p784_p13, %p774_p12 }
  0x18   : > { %p787_p3 = pneg %p786_p0 }
  0x1a   : > { %p794_p2 = pnand %p793_p10, %p787_p3 }
  0x1c   : > { %797 = shalt.err (!%p794_p2)
}
  0x1d   : > { %s897_s5 = smov 128   ;;  %s898_s6 = smov 8  }
  0x1e   : > { %719 = dma.hbm_to_vmem [thread:$0]  (!%p980_p11), %s1104_s1, 384, %s165_s25, [#allocation6], %s897_s5, %s897_s5, %s898_s6  }
  0x1f   : > { %p27_p9 = scmp.eq.s32.totalorder %s26_s29, 0  ;;  %p36_p12 = scmp.ne.s32.totalorder %s890_s17, %s886_s16 }
  0x20   : > { %p37_p10 = scmp.eq.s32.totalorder %s894_s18, 0  ;;  %p729_p2 = scmp.lt.s32.totalorder %s894_s18, 2 }
  0x21   : > { %s1002_s9 = scalar_select %p27_p9, %s890_s17, %s29_s28  }
  0x22   : > { %p38_p13 = por %p37_p10, %p36_p12  ;;  %p1116_p0 = scmp.eq.s32.totalorder %s952_s19, 1 }
  0x23   : > { %s178_s11 = sand.u32 1, %s890_s17   ;;  %s671_s12 = sshll.u32 %s894_s18, 7 }
  0x24   : > { %p1006_p3 = por %p1116_p0, %p36_p12  ;;  %s670_s13 = sshll.u32 %s178_s11, 3 }
  0x25   : > { %s1015_s24 = scalar_lea.hbm %s1103_s0, %s671_s12  ;;  %s182_s25 = scalar_lea.vmem [#allocation2], %s670_s13 }
  0x26   : > { %s1117_s10 = scalar_select %p1006_p3, 1, 0 }
  0x27   : > { %s189_s26 = sshll.u32 %s182_s25, 4  ;;  %p1017_p11 = pnand %p729_p2, %p38_p13  ;;  %s190_s26 = int_to_ptr.vmem [resolvable:$true] %s189_s26 }
  0x28   : > { %s179_s29 = scalar_lea.sflag [#allocation3], %s178_s11  ;;  %s798_s30 = scalar_lea.hbm %s1015_s24, 128 }
  0x29   : > { %p799_p5 = scmp.ne.s32.totalorder %s1015_s24, %s798_s30  ;;  %p800_p7 = pneg %p1017_p11 }
  0x2a   : > { %s803_s7 = scalar_lea.hbm %s1103_s0, 256  ;;  %p804_p10 = scmp.lt.s32.totalorder %s1015_s24, %s1103_s0 }
  0x2b   : > { %p801_p9 = pnand %p800_p7, %p799_p5  ;;  %p805_p2 = scmp.lt.s32.totalorder %s803_s7, %s798_s30 }
  0x2d   : > { %p802_p12 = pneg %p801_p9  ;;  %p806_p13 = por %p805_p2, %p804_p10 }
  0x2f   : > { %p807_p0 = pnand %p806_p13, %p802_p12 }
  0x31   : > { %810 = shalt.err (!%p807_p0)
}
  0x32   : > { %s811_s13 = scalar_lea.vmem %s190_s26, 128  ;;  %s899_s11 = smov [#allocation2]  }
  0x33   : > { %p812_p1 = scmp.ne.s32.totalorder %s190_s26, %s811_s13  ;;  %s816_s14 = sshll.u32 %s899_s11, 4  ;;  %s817_s14 = int_to_ptr.vmem [resolvable:$false] %s816_s14 }
  0x34   : > { %s818_s20 = scalar_lea.vmem %s817_s14, 256  ;;  %p819_p5 = scmp.lt.s32.totalorder %s190_s26, %s817_s14 }
  0x35   : > { %p814_p6 = pnand %p812_p1, %p800_p7  ;;  %p820_p9 = scmp.lt.s32.totalorder %s818_s20, %s811_s13 }
  0x37   : > { %p815_p3 = pneg %p814_p6  ;;  %p821_p4 = por %p820_p9, %p819_p5 }
  0x39   : > { %p822_p8 = pnand %p821_p4, %p815_p3 }
  0x3b   : > { %825 = shalt.err (!%p822_p8)
}
  0x3c   : > { %723 = dma.hbm_to_vmem [thread:$0]  (!%p1017_p11), %s1015_s24, 128, %s190_s26, %s179_s29  }
  0x3d   : > { %p1119_p12 = scmp.ne.s32.totalorder %s1114_s23, 0 }
  0x3e   : > { %s1038_s25 = sand.u32 (!%p1119_p12), 1, %s886_s16   ;;  %p1120_p1 = scmp.ne.s32.totalorder (!%p1119_p12), %s1112_s21, 0 }
  0x3f   : > { %198 = sbr.rel (%p1119_p12) target bundleno = 762 (0x2fa), region = 28  ;;  %s673_s30 = sshll.u32 (!%p1119_p12), %s1038_s25, 3 }
  0x40   : > { %s201_s5 = scalar_lea.sflag (!%p1119_p12), [#allocation3], %s1038_s25  ;;  %s204_s6 = scalar_lea.vmem (!%p1119_p12), [#allocation2], %s673_s30 }
  0x44   : > { %869 = dma.done.wait (%p1120_p1), %s201_s5, 128  }
  0x45   : > { %871 = vsyncadd (%p1120_p1), %s201_s5, 4294967168  ;;  %p1121_p4 = scmp.eq.s32.totalorder %s952_s19, 0 }
  0x47   : > { %873 = dma.done.wait (%p1121_p4), [#allocation6], 384   ;;  %p1122_p6 = pmov %p1121_p4 }
  0x48   : > { %v249_v0 = vld [vmem:[%s204_s6] sm:$0xff]  ;;  %s900_s23 = smov 16   ;;  %v901_v1 = vmov 0.0   ;;  %vm250_vm0 = vcmask 1047680   ;;  %vm902_vm1 = vmmov 0   ;;  %vm275_vm2 = vcmask 64512  }
  0x49   : > { %875 = vsyncadd (%p1122_p6), [#allocation6], 4294966912  ;;  %251 = vrot.lane.b32.xlu0 %v249_v0, %s900_s23  ;;  %693 = vmatprep.subr.mxu0 %v901_v1  ;;  %v272_v4 = vld [vmem:[#allocation5 + $0x8] sm:$0xff]  ;;  %s903_s21 = smov 113   ;;  %s904_s24 = smov 127   ;;  %v257_v7 = vlaneseq  ;;  %v270_v9 = vld [vmem:[#allocation5] sm:$0xff] }
  0x4a   : > { %698 = vmatprep.subr.mxu1 %v901_v1  ;;  %695 = vmatprep.mubr.msk.f32.mxu0 %vm902_vm1, %v901_v1  ;;  %v274_v11 = vld [vmem:[#allocation5 + $0x10] sm:$0xff]  ;;  %vm496_vm5 = vcmask 130048   ;;  %s228_s26 = scalar_lea.vmem [#allocation7], %s673_s30  ;;  %s684_s28 = sshll.u32 %s952_s19, 7 }
  0x4b   : > { %699 = vmatpush3.msra.mxu1 %v249_v0  ;;  %700 = vmatprep.mubr.msk.f32.mxu1 %vm902_vm1, %v901_v1  ;;  %v258_v8 = vand.u32 127, %v257_v7  ;;  %s530_s8 = scalar_lea.hbm %s1105_s2, %s684_s28  ;;  %s532_s12 = sshll.u32 %s228_s26, 4  ;;  %s533_s12 = int_to_ptr.vmem [resolvable:$true] %s532_s12 }
  0x4c   : > { %701 = vmatmul.mubr.msk.f32.vlgmr.msra.gmra.mxu1 %vm275_vm2, %v272_v4  ;;  %s511_s13 = scalar_lea.sflag [#allocation4], %s1038_s25  ;;  %s826_s11 = scalar_lea.vmem %s533_s12, 128 }
  0x4d   : > { %vm259_vm3 = vcmp.ge.s32.totalorder %v258_v8, 1  ;;  %vm265_vm4 = vcmp.lt.s32.totalorder %v258_v8, 15  ;;  %p827_p8 = scmp.ne.s32.totalorder %s533_s12, %s826_s11  ;;  %p1123_p3 = scmp.ne.s32.totalorder %s1117_s10, 0 }
  0x4e   : > { %s905_s14 = smov [#allocation7]  }
  0x4f   : > { %p828_p11 = pnand %p827_p8, %p1123_p3  ;;  %s830_s20 = sshll.u32 %s905_s14, 4  ;;  %s831_s20 = int_to_ptr.vmem [resolvable:$false] %s830_s20 }
  0x50   : > { %s832_s30 = scalar_lea.vmem %s831_s20, 256  ;;  %p833_p10 = scmp.lt.s32.totalorder %s533_s12, %s831_s20 }
  0x51   : > { %p829_p7 = pneg %p828_p11  ;;  %p834_p2 = scmp.lt.s32.totalorder %s832_s30, %s826_s11 }
  0x53   : > { %p835_p13 = por %p834_p2, %p833_p10 }
  0x55   : > { %p836_p0 = pnand %p835_p13, %p829_p7 }
  0xbb   : > { %v252_v2 = vpop.permute.xlu0 %251 }
  0xbc   : > { %v253_v3 = vsel %vm250_vm0, %v252_v2, %v249_v0 }
  0xbd   : > { %254 = vrot.lane.b32.xlu0 %v253_v3, %s900_s23 }
 0x10c   : > { %v418_v13 = vpop.f32.mrf.mxu1 }
 0x10e   : > { %v702_v14 = vpop.f32.mrf.mxu1 }
 0x12f   : > { %v255_v5 = vpop.permute.xlu0 %254 }
 0x130   : > { %v256_v6 = vsel %vm250_vm0, %v255_v5, %v249_v0 }
 0x131   : > { %261 = vrot.lane.b32.xlu1 %v256_v6, %s903_s21 }
 0x135   : > { %266 = vrot.lane.b32.xlu1 %v256_v6, %s904_s24 }
 0x1a3   : > { %v262_v10 = vpop.permute.xlu1 %261 }
 0x1a4   : > { %694 = vmatpush3.msk.msra.mxu0 %vm259_vm3, %v262_v10 }
 0x1a5   : > { %696 = vmatmul.mubr.msk.f32.vlgmr.msra.gmra.mxu0 %vm275_vm2, %v270_v9  ;;  %703 = vmatprep.subr.mxu0 %v901_v1 }
 0x1a6   : > { %705 = vmatprep.mubr.msk.f32.mxu0 %vm902_vm1, %v901_v1 }
 0x1a7   : > { %v267_v12 = vpop.permute.xlu1 %266 }
 0x1a8   : > { %704 = vmatpush3.msk.msra.mxu0 %vm265_vm4, %v267_v12 }
 0x1a9   : > { %706 = vmatmul.mubr.msk.f32.vlgmr.msra.gmra.mxu0 %vm275_vm2, %v274_v11 }
 0x265   : > { %v345_v15 = vpop.f32.mrf.mxu0 }
 0x266   : > { %v419_v17 = vadd.f32 %v418_v13, %v345_v15 }
 0x267   : > { %v697_v16 = vpop.f32.mrf.mxu0 }
 0x269   : > { %v491_v18 = vpop.f32.mrf.mxu0 }
 0x26a   : > { %v495_v19 = vadd.f32 %v491_v18, %v419_v17 }
 0x26b   : > { %v707_v20 = vpop.f32.mrf.mxu0 }
 0x26c   : > { %v498_v21 = vsel %vm496_vm5, %v495_v19, 0.0  ;;  %v502_v22 = vmul.f32 %v495_v19, %v495_v19  ;;  %497 = vst.msk [vmem:[%s228_s26] sm:$0xff] %vm496_vm5, %v495_v19 }
 0x26d   : > { %499 = vadd.xlane.f32.xlu0 %v498_v21 }
 0x26e   : > { %v503_v23 = vsel %vm496_vm5, %v502_v22, 0.0 }
 0x26f   : > { %504 = vadd.xlane.f32.xlu1 %v503_v23 }
 0x270   : > { %839 = shalt.err (!%p836_p0)
}
 0x271   : > { %s840_s5 = scalar_lea.hbm %s530_s8, 128  ;;  %s844_s23 = scalar_lea.hbm %s1105_s2, 256 }
 0x272   : > { %p841_p5 = scmp.ne.s32.totalorder %s530_s8, %s840_s5  ;;  %p845_p1 = scmp.lt.s32.totalorder %s530_s8, %s1105_s2 }
 0x273   : > { %p846_p4 = scmp.lt.s32.totalorder %s844_s23, %s840_s5 }
 0x274   : > { %p842_p9 = pnand %p841_p5, %p1123_p3 }
 0x275   : > { %p847_p6 = por %p846_p4, %p845_p1 }
 0x276   : > { %p843_p12 = pneg %p842_p9 }
 0x278   : > { %p848_p8 = pnand %p847_p6, %p843_p12 }
 0x27a   : > { %851 = shalt.err (!%p848_p8)
}
 0x27b   : > { %714 = dma.vmem_to_hbm [thread:$0]  (%p1123_p3), %s533_s12, 128, %s530_s8, %s511_s13   ;;  %vm507_vm6 = vcmask 7168  }
 0x27c   : > { %p241_p11 = scmp.lt.s32.totalorder %s952_s19, 1 }
 0x27e   : > { %s1131_s19 = smov (!%p241_p11, %s952_s19), 1 }
 0x27f   : > { %s676_s26 = sshll.u32 %s1131_s19, 3 }
 0x280   : > { %s244_s7 = scalar_lea.vmem %s1106_s3, %s676_s26  ;;  %s248_s20 = scalar_lea.vmem %s1107_s4, %s676_s26 }
 0x2f6   : > { %v500_v24 = vpop.xlane.xlu0 %499 }
 0x2f7   : > { %508 = vst.msk [vmem:[%s244_s7] sm:$0xff] %vm507_vm6, %v500_v24 }
 0x2f8   : > { %v505_v25 = vpop.xlane.xlu1 %504 }
 0x2f9   : > { %509 = vst.msk [vmem:[%s248_s20] sm:$0xff] %vm507_vm6, %v505_v25 }
 0x2fa PF: > { %s550_s10 = sand.u32 1, %s882_s15   ;;  %p1124_p3 = scmp.ne.s32.totalorder %s1113_s22, 0 }
 0x2fb   : > { %p1125_p7 = scmp.ge.s32.totalorder %s894_s18, 2  ;;  %s551_s19 = scalar_lea.sflag [#allocation4], %s550_s10 }
 0x2fd   : > { %p725_p10 = pnand %p1125_p7, %p1124_p3 }
 0x2ff   : > { %p726_p2 = pneg %p725_p10 }
 0x301   : > { %877 = dma.done.wait (%p726_p2), %s551_s19, 128  }
 0x302   : > { %879 = vsyncadd (%p726_p2), %s551_s19, 4294967168  ;;  %p19_p13 = scmp.ge.s32.totalorder %s985_s27, 4   ;;  %s1126_s15 = smov %s886_s16 }
 0x303   : > { %s1127_s16 = smov %s890_s17  ;;  %s1128_s17 = smov %s1002_s9 }
 0x304   : > { %s1129_s18 = smov %s985_s27  ;;  %21 = sbr.rel (!%p19_p13) target bundleno = 6 (0x6), region = 103 }
 0x309   :  { %570 = vsyncpa [#allocation3], 1 }
 0x30a   :  { %572 = vsyncpa [#allocation3 + $0x1], 1 }
 0x30b   :  { %573 = vsyncpa [#allocation6], 1 }
 0x30c   :  { %574 = vsyncpa [#allocation4], 1 }
 0x30d   :  { %576 = vsyncpa [#allocation4 + $0x1], 1 }

</bundles_post_ra>
